<compile_context>
chip_gen: v5e
topology: v5e:2x2
jax: 0.10.0
libtpu: 0.0.40
codegen_flags: <defaults>
</compile_context>

<pallas_src>
import jax
import jax.numpy as jnp
from jax.experimental import pallas as pl
from jax.experimental.pallas import tpu as pltpu

B, F, D, H = 2, 4, 16, 32            # batch, fields, dim1, hidden_size
FD = F * D                           # flattened feature width = 64 (lane-dense)
U1, U2 = 4, 1                        # projection_hidden_units = [4, 1]
EPS = 1e-5                           # nn.LayerNorm default eps

# weight-slab block indices (sublane-packed, each block is (FD, FD))
_WA, _WP, _WS, _P, _W1 = 0, 1, 2, 3, 4
# bias-slab row indices
_BA, _BP, _BS, _G, _BE, _B1, _W2T, _B2 = range(8)


def contextnet_kernel(x_ref,        # (B, FD)       lane-dense flattened input
                      w_ref,        # (5*FD, FD)    packed weight slab
                      b_ref,        # (8, FD)       packed bias/scale slab
                      out_ref):     # (B, U2)
    x = x_ref[...]                                   # (B, FD)
    bias = b_ref[...]                                # (8, FD), one-ish vreg

    def wblk(k):                                     # aligned static sublane slice
        return w_ref[k * FD:(k + 1) * FD, :]         # (FD, FD)

    def brow(r):                                     # (1, FD), broadcasts over batch
        return bias[r:r + 1, :]

    # 1) shared aggregation FFN over the flattened input (one MXU push).
    #    Wa block cols H:FD and ba lanes H:FD are zero -> agg lanes H:FD stay 0.
    agg = jnp.maximum(
        jnp.dot(x, wblk(_WA), preferred_element_type=jnp.float32) + brow(_BA), 0.0)

    # 2) all per-field contextual projections fused into one matmul:
    #    ce[b, f*D+d] = (agg @ Wp[f] + bp[f])[b, d]
    ce = jnp.dot(agg, wblk(_WP), preferred_element_type=jnp.float32) + brow(_BP)

    # 3) Hadamard refine of the raw embeddings (one vreg-wide multiply).
    merged = x * ce

    # 4) SFFN linear for every field at once via the block-diagonal Ws.
    h = jnp.dot(merged, wblk(_WS), preferred_element_type=jnp.float32) + brow(_BS)

    # 5) per-field LayerNorm over D without any cross-lane reductions:
    #    P = kron(I_F, 11^T / D) computes the segment mean broadcast per field.
    hm = jnp.dot(h, wblk(_P), preferred_element_type=jnp.float32)       # per-field mean
    c = h - hm
    var = jnp.dot(c * c, wblk(_P), preferred_element_type=jnp.float32)  # biased variance
    hn = c * jax.lax.rsqrt(var + EPS) * brow(_G) + brow(_BE)

    # 6) DNN head: Linear(FD->U1)+relu (one push; W1 zero-padded to FD cols),
    #    then Linear(U1->1) as a lane reduction against W2^T + b2.
    y1 = jnp.maximum(
        jnp.dot(hn, wblk(_W1), preferred_element_type=jnp.float32) + brow(_B1), 0.0)
    y2 = jnp.sum(y1 * brow(_W2T), axis=-1, keepdims=True) + bias[_B2:_B2 + 1, 0:1]
    out_ref[...] = y2                                # (B, 1): sub-128 masked store; noise at B=2


def pack_params(params):
    """Fold the natural per-layer parameters into two VMEM slabs (done once)."""
    wa = params["wa"].reshape(FD, H)                                   # Linear(FD, H)
    wp2 = jnp.transpose(params["wp"], (1, 0, 2)).reshape(H, FD)        # Wp2[h, f*D+d] = Wp[f,h,d]
    ws_bd = jnp.kron(jnp.eye(F, dtype=jnp.float32), params["ws"])      # block-diag Ws, (FD, FD)
    pmat = jnp.kron(jnp.eye(F, dtype=jnp.float32),
                    jnp.full((D, D), 1.0 / D, jnp.float32))            # field-averaging matrix
    w1 = params["w1"].reshape(FD, U1)                                  # Linear(FD, U1)

    pad_cols = lambda m: jnp.pad(m, ((0, 0), (0, FD - m.shape[1])))
    pad_rows = lambda m: jnp.pad(m, ((0, FD - m.shape[0]), (0, 0)))

    w_slab = jnp.concatenate([
        pad_cols(wa),      # block 0: cols H:FD zero -> agg lanes H:FD stay zero
        pad_rows(wp2),     # block 1: rows H:FD zero -> zero agg lanes are ignored
        ws_bd,             # block 2
        pmat,              # block 3
        pad_cols(w1),      # block 4: cols U1:FD zero -> y1 lanes U1:FD stay zero
    ], axis=0).astype(jnp.float32)                                     # (5*FD, FD)

    def pad_vec(v):
        v = jnp.asarray(v, jnp.float32).reshape(-1)
        return jnp.pad(v, (0, FD - v.shape[0]))

    b_slab = jnp.stack([
        pad_vec(params["ba"]),                          # row 0: aggregation bias (H, zero-padded)
        params["bp"].reshape(FD),                       # row 1: per-field projection bias
        jnp.tile(params["bs"].reshape(D), F),           # row 2: SFFN bias, tiled per field
        jnp.tile(params["gamma"].reshape(D), F),        # row 3: LayerNorm gamma, tiled
        jnp.tile(params["beta"].reshape(D), F),         # row 4: LayerNorm beta, tiled
        pad_vec(params["b1"]),                          # row 5: DNN L1 bias
        pad_vec(params["w2"].reshape(U1)),              # row 6: W2^T (Linear(U1,1) weight)
        pad_vec(params["b2"]),                          # row 7: DNN L2 bias (lane 0)
    ], axis=0).astype(jnp.float32)                      # (8, FD)
    return w_slab, b_slab


def contextnet_forward(x, w_slab, b_slab):
    """x: (B, F, D) float32 -> (B, 1) float32."""
    x_flat = x.reshape(B, FD).astype(jnp.float32)       # free reshape, no transpose copy
    vmem = pl.BlockSpec(memory_space=pltpu.MemorySpace.VMEM)
    return pl.pallas_call(
        contextnet_kernel,
        out_shape=jax.ShapeDtypeStruct((B, U2), jnp.float32),
        in_specs=[vmem, vmem, vmem],
        out_specs=vmem,
    )(x_flat, w_slab, b_slab)


def init_params(key):
    ks = jax.random.split(key, 8)
    s = 0.05
    return {
        # shared aggregation Linear(F*D -> H), stored as (F, D, H)
        "wa": s * jax.random.normal(ks[0], (F, D, H), jnp.float32),
        "ba": jnp.zeros((1, H), jnp.float32),
        # per-field projection Linear(H -> D)
        "wp": s * jax.random.normal(ks[1], (F, H, D), jnp.float32),
        "bp": jnp.zeros((F, 1, D), jnp.float32),
        # SFFN linear (D -> D) + LayerNorm(D)
        "ws": s * jax.random.normal(ks[2], (D, D), jnp.float32),
        "bs": jnp.zeros((1, D), jnp.float32),
        "gamma": jnp.ones((1, D), jnp.float32),
        "beta": jnp.zeros((1, D), jnp.float32),
        # DNN: Linear(F*D -> 4) stored as (F, D, 4), then Linear(4 -> 1)
        "w1": s * jax.random.normal(ks[3], (F, D, U1), jnp.float32),
        "b1": jnp.zeros((1, U1), jnp.float32),
        "w2": s * jax.random.normal(ks[4], (U1, U2), jnp.float32),
        "b2": jnp.zeros((1, U2), jnp.float32),
    }


def contextnet_ref(x, params):
    """Pure-JAX reference with the unfused per-field math (mirrors the PyTorch module)."""
    xf = x.reshape(B, FD)
    agg = jax.nn.relu(xf @ params["wa"].reshape(FD, H) + params["ba"].reshape(H))
    outs = []
    for f in range(F):
        ce = agg @ params["wp"][f] + params["bp"][f]
        merged = x[:, f, :] * ce
        h = merged @ params["ws"] + params["bs"].reshape(D)
        mu = jnp.mean(h, axis=-1, keepdims=True)
        var = jnp.mean((h - mu) ** 2, axis=-1, keepdims=True)
        h = (h - mu) * jax.lax.rsqrt(var + EPS)
        outs.append(h * params["gamma"].reshape(D) + params["beta"].reshape(D))
    hcat = jnp.concatenate(outs, axis=-1)
    y1 = jax.nn.relu(hcat @ params["w1"].reshape(FD, U1) + params["b1"].reshape(U1))
    return y1 @ params["w2"] + params["b2"].reshape(U2)


if __name__ == "__main__":
    key = jax.random.PRNGKey(0)
    kx, kp = jax.random.split(key)
    x = jax.random.normal(kx, (B, F, D), jnp.float32)     # (batch, fields, dim1)
    params = init_params(kp)
    w_slab, b_slab = pack_params(params)

    out = contextnet_forward(x, w_slab, b_slab)
    out = jax.block_until_ready(out)
    assert out.shape == (B, U2), out.shape

    ref = jax.block_until_ready(contextnet_ref(x, params))
    assert jnp.allclose(out, ref, rtol=1e-4, atol=1e-4), (out, ref)

    print("KERNEL_OK")
</pallas_src>

<mosaic_0001>
module attributes {stable_mosaic.version = 11 : i64} {
  func.func @contextnet_kernel(%arg0: memref<2x64xf32, #tpu.memory_space<vmem>>, %arg1: memref<320x64xf32, #tpu.memory_space<vmem>>, %arg2: memref<8x64xf32, #tpu.memory_space<vmem>>, %arg3: memref<2x1xf32, #tpu.memory_space<vmem>>) attributes {dimension_semantics = [], scalar_prefetch = 0 : i64, scratch_operands = 0 : i64, tpu.core_type = #tpu.core_type<tc>} {
    %c0 = arith.constant 0 : index
    %c0_0 = arith.constant 0 : index
    %0 = vector.load %arg0[%c0, %c0_0] : memref<2x64xf32, #tpu.memory_space<vmem>>, vector<2x64xf32>
    %c0_1 = arith.constant 0 : index
    %c0_2 = arith.constant 0 : index
    %1 = vector.load %arg2[%c0_1, %c0_2] : memref<8x64xf32, #tpu.memory_space<vmem>>, vector<8x64xf32>
    %c0_3 = arith.constant 0 : index
    %c0_4 = arith.constant 0 : index
    %2 = vector.load %arg1[%c0_3, %c0_4] : memref<320x64xf32, #tpu.memory_space<vmem>>, vector<64x64xf32>
    %cst = arith.constant dense<0.000000e+00> : vector<2x64xf32>
    %3 = tpu.matmul %0, %2, %cst {dimension_numbers = #tpu.dot_dimension_numbers<[1], [0], [0], [1], [0, 0, 1, 1], [], []>} : vector<2x64xf32>, vector<64x64xf32>, vector<2x64xf32> -> vector<2x64xf32>
    %4 = vector.extract_strided_slice %1 {offsets = [0, 0], sizes = [1, 64], strides = [1, 1]} : vector<8x64xf32> to vector<1x64xf32>
    %5 = vector.broadcast %4 : vector<1x64xf32> to vector<2x64xf32>
    %6 = arith.addf %3, %5 : vector<2x64xf32>
    %cst_5 = arith.constant 0.000000e+00 : f32
    %7 = vector.broadcast %cst_5 : f32 to vector<2x64xf32>
    %8 = arith.maximumf %6, %7 : vector<2x64xf32>
    %c64 = arith.constant 64 : index
    %c0_6 = arith.constant 0 : index
    %9 = vector.load %arg1[%c64, %c0_6] : memref<320x64xf32, #tpu.memory_space<vmem>>, vector<64x64xf32>
    %cst_7 = arith.constant dense<0.000000e+00> : vector<2x64xf32>
    %10 = tpu.matmul %8, %9, %cst_7 {dimension_numbers = #tpu.dot_dimension_numbers<[1], [0], [0], [1], [0, 0, 1, 1], [], []>} : vector<2x64xf32>, vector<64x64xf32>, vector<2x64xf32> -> vector<2x64xf32>
    %11 = vector.extract_strided_slice %1 {offsets = [1, 0], sizes = [1, 64], strides = [1, 1]} : vector<8x64xf32> to vector<1x64xf32>
    %12 = vector.broadcast %11 : vector<1x64xf32> to vector<2x64xf32>
    %13 = arith.addf %10, %12 : vector<2x64xf32>
    %14 = arith.mulf %0, %13 : vector<2x64xf32>
    %c128 = arith.constant 128 : index
    %c0_8 = arith.constant 0 : index
    %15 = vector.load %arg1[%c128, %c0_8] : memref<320x64xf32, #tpu.memory_space<vmem>>, vector<64x64xf32>
    %cst_9 = arith.constant dense<0.000000e+00> : vector<2x64xf32>
    %16 = tpu.matmul %14, %15, %cst_9 {dimension_numbers = #tpu.dot_dimension_numbers<[1], [0], [0], [1], [0, 0, 1, 1], [], []>} : vector<2x64xf32>, vector<64x64xf32>, vector<2x64xf32> -> vector<2x64xf32>
    %17 = vector.extract_strided_slice %1 {offsets = [2, 0], sizes = [1, 64], strides = [1, 1]} : vector<8x64xf32> to vector<1x64xf32>
    %18 = vector.broadcast %17 : vector<1x64xf32> to vector<2x64xf32>
    %19 = arith.addf %16, %18 : vector<2x64xf32>
    %c192 = arith.constant 192 : index
    %c0_10 = arith.constant 0 : index
    %20 = vector.load %arg1[%c192, %c0_10] : memref<320x64xf32, #tpu.memory_space<vmem>>, vector<64x64xf32>
    %cst_11 = arith.constant dense<0.000000e+00> : vector<2x64xf32>
    %21 = tpu.matmul %19, %20, %cst_11 {dimension_numbers = #tpu.dot_dimension_numbers<[1], [0], [0], [1], [0, 0, 1, 1], [], []>} : vector<2x64xf32>, vector<64x64xf32>, vector<2x64xf32> -> vector<2x64xf32>
    %22 = arith.subf %19, %21 : vector<2x64xf32>
    %23 = arith.mulf %22, %22 : vector<2x64xf32>
    %c192_12 = arith.constant 192 : index
    %c0_13 = arith.constant 0 : index
    %24 = vector.load %arg1[%c192_12, %c0_13] : memref<320x64xf32, #tpu.memory_space<vmem>>, vector<64x64xf32>
    %cst_14 = arith.constant dense<0.000000e+00> : vector<2x64xf32>
    %25 = tpu.matmul %23, %24, %cst_14 {dimension_numbers = #tpu.dot_dimension_numbers<[1], [0], [0], [1], [0, 0, 1, 1], [], []>} : vector<2x64xf32>, vector<64x64xf32>, vector<2x64xf32> -> vector<2x64xf32>
    %cst_15 = arith.constant 9.99999974E-6 : f32
    %26 = vector.broadcast %cst_15 : f32 to vector<2x64xf32>
    %27 = arith.addf %25, %26 : vector<2x64xf32>
    %28 = math.rsqrt %27 : vector<2x64xf32>
    %29 = arith.mulf %22, %28 : vector<2x64xf32>
    %30 = vector.extract_strided_slice %1 {offsets = [3, 0], sizes = [1, 64], strides = [1, 1]} : vector<8x64xf32> to vector<1x64xf32>
    %31 = vector.broadcast %30 : vector<1x64xf32> to vector<2x64xf32>
    %32 = arith.mulf %29, %31 : vector<2x64xf32>
    %33 = vector.extract_strided_slice %1 {offsets = [4, 0], sizes = [1, 64], strides = [1, 1]} : vector<8x64xf32> to vector<1x64xf32>
    %34 = vector.broadcast %33 : vector<1x64xf32> to vector<2x64xf32>
    %35 = arith.addf %32, %34 : vector<2x64xf32>
    %c256 = arith.constant 256 : index
    %c0_16 = arith.constant 0 : index
    %36 = vector.load %arg1[%c256, %c0_16] : memref<320x64xf32, #tpu.memory_space<vmem>>, vector<64x64xf32>
    %cst_17 = arith.constant dense<0.000000e+00> : vector<2x64xf32>
    %37 = tpu.matmul %35, %36, %cst_17 {dimension_numbers = #tpu.dot_dimension_numbers<[1], [0], [0], [1], [0, 0, 1, 1], [], []>} : vector<2x64xf32>, vector<64x64xf32>, vector<2x64xf32> -> vector<2x64xf32>
    %38 = vector.extract_strided_slice %1 {offsets = [5, 0], sizes = [1, 64], strides = [1, 1]} : vector<8x64xf32> to vector<1x64xf32>
    %39 = vector.broadcast %38 : vector<1x64xf32> to vector<2x64xf32>
    %40 = arith.addf %37, %39 : vector<2x64xf32>
    %cst_18 = arith.constant 0.000000e+00 : f32
    %41 = vector.broadcast %cst_18 : f32 to vector<2x64xf32>
    %42 = arith.maximumf %40, %41 : vector<2x64xf32>
    %43 = vector.extract_strided_slice %1 {offsets = [6, 0], sizes = [1, 64], strides = [1, 1]} : vector<8x64xf32> to vector<1x64xf32>
    %44 = vector.broadcast %43 : vector<1x64xf32> to vector<2x64xf32>
    %45 = arith.mulf %42, %44 : vector<2x64xf32>
    %cst_19 = arith.constant dense<0.000000e+00> : vector<2xf32>
    %46 = vector.multi_reduction <add>, %45, %cst_19 [1] : vector<2x64xf32> to vector<2xf32>
    %47 = vector.shape_cast %46 : vector<2xf32> to vector<2x1xf32>
    %48 = vector.extract_strided_slice %1 {offsets = [7, 0], sizes = [1, 1], strides = [1, 1]} : vector<8x64xf32> to vector<1x1xf32>
    %49 = vector.broadcast %48 : vector<1x1xf32> to vector<2x1xf32>
    %50 = arith.addf %47, %49 : vector<2x1xf32>
    %c0_20 = arith.constant 0 : index
    %c0_21 = arith.constant 0 : index
    %51 = vector.load %arg3[%c0_20, %c0_21] : memref<2x1xf32, #tpu.memory_space<vmem>>, vector<2x1xf32>
    tpu.vector_store %arg3[%c0_20, %c0_21], %50 {strides = array<i32>} : memref<2x1xf32, #tpu.memory_space<vmem>>, vector<2x1xf32>,
    return
  }
}

</mosaic_0001>

<bundles_post_ra>
// kernel: tpu_custom_call.1
= control target key start
LH: loop header
LB: loop body
LE: loop exit
PB: predicated region body
PF: predicated region fallthrough
CT: control target
= control target key end

     0   :  { %vm25_vm0 = vcmask 523264   ;;  %vm221_vm4 = vcmask 517120   ;;  %vm227_vm5 = vcmask 1024   ;;  %s406_s1 = inlined_call_operand.vmem [shape: f32[320,64], index: 1, kind: input, shape index: {}]   ;;  %s407_s0 = inlined_call_operand.vmem [shape: f32[2,64], index: 0, kind: input, shape index: {}]   ;;  %s408_s2 = inlined_call_operand.vmem [shape: f32[8,64], index: 2, kind: input, shape index: {}]   ;;  %s409_s3 = inlined_call_operand.vmem [shape: f32[2,1], index: 3, kind: output, shape index: {}]  }
   0x1   :  { %v23_v0 = vld [vmem:[%s406_s1 + $0x38] sm:$0xff]  ;;  %v22_v1 = vld [vmem:[%s406_s1 + $0x30] sm:$0xff]  ;;  %v21_v2 = vld [vmem:[%s406_s1 + $0x28] sm:$0xff] }
   0x2   :  { %37 = vmatpush.msra.mxu0 %v23_v0  ;;  %v57_v3 = vld [vmem:[%s406_s1 + $0x78] sm:$0xff]  ;;  %v56_v4 = vld [vmem:[%s406_s1 + $0x70] sm:$0xff]  ;;  %v20_v5 = vld [vmem:[%s406_s1 + $0x20] sm:$0xff] }
   0x3   :  { %70 = vmatpush.msra.mxu1 %v57_v3  ;;  %v55_v6 = vld [vmem:[%s406_s1 + $0x68] sm:$0xff]  ;;  %v19_v7 = vld [vmem:[%s406_s1 + $0x18] sm:$0xff]  ;;  %v54_v8 = vld [vmem:[%s406_s1 + $0x60] sm:$0xff] }
   0x4   :  { %38 = vmatpush.msra.mxu0 %v22_v1  ;;  %v18_v9 = vld [vmem:[%s406_s1 + $0x10] sm:$0xff]  ;;  %v53_v10 = vld [vmem:[%s406_s1 + $0x58] sm:$0xff]  ;;  %v17_v11 = vld [vmem:[%s406_s1 + $0x8] sm:$0xff] }
   0x5   :  { %71 = vmatpush.msra.mxu1 %v56_v4  ;;  %v16_v12 = vld [vmem:[%s406_s1] sm:$0xff]  ;;  %v52_v14 = vld [vmem:[%s406_s1 + $0x50] sm:$0xff]  ;;  %v51_v15 = vld [vmem:[%s406_s1 + $0x48] sm:$0xff] }
   0x6   :  { %39 = vmatpush.msra.mxu0 %v21_v2  ;;  %v14_v13 = vld [vmem:[%s407_s0] sm:$0x3]  ;;  %v90_v17 = vld [vmem:[%s406_s1 + $0xb8] sm:$0xff]  ;;  %v89_v18 = vld [vmem:[%s406_s1 + $0xb0] sm:$0xff] }
   0x7   :  { %72 = vmatpush.msra.mxu1 %v55_v6  ;;  %v50_v16 = vld [vmem:[%s406_s1 + $0x40] sm:$0xff]  ;;  %103 = vmatpush.msra.mxu2 %v90_v17  ;;  %v88_v19 = vld [vmem:[%s406_s1 + $0xa8] sm:$0xff]  ;;  %v86_v21 = vld [vmem:[%s406_s1 + $0x98] sm:$0xff] }
   0x8   :  { %40 = vmatpush.msra.mxu0 %v20_v5  ;;  %v87_v20 = vld [vmem:[%s406_s1 + $0xa0] sm:$0xff]  ;;  %v85_v27 = vld [vmem:[%s406_s1 + $0x90] sm:$0xff]  ;;  %v84_v28 = vld [vmem:[%s406_s1 + $0x88] sm:$0xff] }
   0x9   :  { %73 = vmatpush.msra.mxu1 %v54_v8  ;;  %104 = vmatpush.msra.mxu2 %v89_v18  ;;  %v331_v22 = vld [vmem:[%s408_s2] sm:$0xff]  ;;  %v122_v30 = vld [vmem:[%s406_s1 + $0xf8] sm:$0xff]  ;;  %v121_v31 = vld [vmem:[%s406_s1 + $0xf0] sm:$0xff] }
   0xa   :  { %41 = vmatpush.msra.mxu0 %v19_v7  ;;  %v24_v23 = vperm.slane %v331_v22, 0  ;;  %v83_v29 = vld [vmem:[%s406_s1 + $0x80] sm:$0xff]  ;;  %134 = vmatpush.msra.mxu3 %v122_v30  ;;  %v120_v32 = vld [vmem:[%s406_s1 + $0xe8] sm:$0xff]  ;;  %v118_v34 = vld [vmem:[%s406_s1 + $0xd8] sm:$0xff]  ;;  %v58_v36 = vperm.slane %v331_v22, 1  ;;  %v91_v42 = vperm.slane %v331_v22, 2 }
   0xb   :  { %74 = vmatpush.msra.mxu1 %v53_v10  ;;  %105 = vmatpush.msra.mxu2 %v88_v19  ;;  %v119_v33 = vld [vmem:[%s406_s1 + $0xe0] sm:$0xff]  ;;  %v117_v35 = vld [vmem:[%s406_s1 + $0xd0] sm:$0xff]  ;;  %v116_v40 = vld [vmem:[%s406_s1 + $0xc8] sm:$0xff]  ;;  %v182_v0 = vperm.slane %v331_v22, 3  ;;  %v184_v3 = vperm.slane %v331_v22, 4  ;;  %v194_v6 = vperm.slane %v331_v22, 5 }
   0xc   :  { %42 = vmatpush.msra.mxu0 %v18_v9  ;;  %135 = vmatpush.msra.mxu3 %v121_v31  ;;  %v115_v41 = vld [vmem:[%s406_s1 + $0xc0] sm:$0xff]  ;;  %v193_v48 = vld [vmem:[%s406_s1 + $0x138] sm:$0xff]  ;;  %v192_v49 = vld [vmem:[%s406_s1 + $0x130] sm:$0xff]  ;;  %v219_v9 = vperm.slane %v331_v22, 6 }
   0xd   :  { %75 = vmatpush.msra.mxu1 %v52_v14  ;;  %106 = vmatpush.msra.mxu2 %v87_v20  ;;  %v191_v50 = vld [vmem:[%s406_s1 + $0x128] sm:$0xff]  ;;  %v190_v51 = vld [vmem:[%s406_s1 + $0x120] sm:$0xff]  ;;  %v189_v52 = vld [vmem:[%s406_s1 + $0x118] sm:$0xff] }
   0xe   :  { %43 = vmatpush.msra.mxu0 %v17_v11  ;;  %136 = vmatpush.msra.mxu3 %v120_v32  ;;  %v188_v53 = vld [vmem:[%s406_s1 + $0x110] sm:$0xff]  ;;  %v187_v54 = vld [vmem:[%s406_s1 + $0x108] sm:$0xff]  ;;  %v186_v55 = vld [vmem:[%s406_s1 + $0x100] sm:$0xff] }
   0xf   :  { %76 = vmatpush.msra.mxu1 %v51_v15  ;;  %107 = vmatpush.msra.mxu2 %v86_v21 }
  0x10   :  { %44 = vmatpush.msra.mxu0 %v16_v12  ;;  %137 = vmatpush.msra.mxu3 %v119_v33 }
  0x11   :  { %233 = vmatmul.msk.f32.vlgmr.msra.gmra.mxu0 %vm25_vm0, %v14_v13  ;;  %77 = vmatpush.msra.mxu1 %v50_v16 }
  0x12   :  { %108 = vmatpush.msra.mxu2 %v85_v27  ;;  %159 = vmatpush.msrb.mxu0 %v122_v30 }
  0x13   :  { %138 = vmatpush.msra.mxu3 %v118_v34  ;;  %206 = vmatpush.msrb.mxu1 %v193_v48 }
  0x14   :  { %109 = vmatpush.msra.mxu2 %v84_v28  ;;  %160 = vmatpush.msrb.mxu0 %v121_v31 }
  0x15   :  { %139 = vmatpush.msra.mxu3 %v117_v35  ;;  %207 = vmatpush.msrb.mxu1 %v192_v49 }
  0x16   :  { %110 = vmatpush.msra.mxu2 %v83_v29  ;;  %161 = vmatpush.msrb.mxu0 %v120_v32 }
  0x17   :  { %140 = vmatpush.msra.mxu3 %v116_v40  ;;  %208 = vmatpush.msrb.mxu1 %v191_v50 }
  0x18   :  { %162 = vmatpush.msrb.mxu0 %v119_v33 }
  0x19   :  { %141 = vmatpush.msra.mxu3 %v115_v41  ;;  %209 = vmatpush.msrb.mxu1 %v190_v51 }
  0x1a   :  { %163 = vmatpush.msrb.mxu0 %v118_v34 }
  0x1b   :  { %210 = vmatpush.msrb.mxu1 %v189_v52 }
  0x1c   :  { %164 = vmatpush.msrb.mxu0 %v117_v35 }
  0x1d   :  { %211 = vmatpush.msrb.mxu1 %v188_v53 }
  0x1e   :  { %165 = vmatpush.msrb.mxu0 %v116_v40 }
  0x1f   :  { %212 = vmatpush.msrb.mxu1 %v187_v54 }
  0x20   :  { %166 = vmatpush.msrb.mxu0 %v115_v41 }
  0x21   :  { %213 = vmatpush.msrb.mxu1 %v186_v55 }
  0x8e   :  { %v46_v24 = vpop.f32.mrf.mxu0 }
  0x8f   :  { %v47_v25 = vadd.f32 %v46_v24, %v24_v23 }
  0x91   :  { %v49_v26 = vmax.f32 %v47_v25, 0.0 }
  0x93   :  { %234 = vmatmul.msk.f32.vlgmr.msra.gmra.mxu1 %vm25_vm0, %v49_v26 }
 0x110   :  { %v79_v37 = vpop.f32.mrf.mxu1 }
 0x111   :  { %v80_v38 = vadd.f32 %v79_v37, %v58_v36 }
 0x113   :  { %v82_v39 = vmul.f32 %v80_v38, %v14_v13  ;;  %v225_v13 = vperm.slane %v331_v22, 7 }
 0x115   :  { %235 = vmatmul.msk.f32.vlgmr.msra.gmra.mxu2 %vm25_vm0, %v82_v39 }
 0x198   :  { %v112_v43 = vpop.f32.mrf.mxu2 }
 0x199   :  { %v113_v44 = vadd.f32 %v112_v43, %v91_v42 }
 0x19b   :  { %236 = vmatmul.msk.f32.vlgmr.msra.gmra.mxu3 %vm25_vm0, %v113_v44 }
 0x21e   :  { %v143_v45 = vpop.f32.mrf.mxu3 }
 0x21f   :  { %v146_v46 = vsub.f32 %v113_v44, %v143_v45 }
 0x221   :  { %v147_v47 = vmul.f32 %v146_v46, %v146_v46 }
 0x223   :  { %237 = vmatmul.msk.f32.vlgmr.msrb.gmra.mxu0 %vm25_vm0, %v147_v47 }
 0x2a0   :  { %v168_v56 = vpop.f32.mrf.mxu0 }
 0x2a1   :  { %v169_v57 = vadd.f32 1e-05, %v168_v56 }
 0x2a3   :  { %239 = vrsqrt.f32 %v169_v57  ;;  %vm177_vm2 = vweird.f32 %v169_v57 }
 0x2a9   :  { %v240_v58 = vpop.eup %239 }
 0x2aa   :  { %v172_v59 = vmul.f32 %v240_v58, %v169_v57  ;;  %vm178_vm1 = vweird.f32 %v240_v58 }
 0x2ab   :  { %vm179_vm3 = vmor %vm177_vm2, %vm178_vm1 }
 0x2ac   :  { %v173_v60 = vmul.f32 %v240_v58, %v172_v59 }
 0x2ae   :  { %v174_v61 = vmul.f32 0.5, %v173_v60 }
 0x2b0   :  { %v175_v62 = vsub.f32 1.5, %v174_v61 }
 0x2b2   :  { %v176_v63 = vmul.f32 %v240_v58, %v175_v62 }
 0x2b4   :  { %v180_v1 = vsel %vm179_vm3, %v240_v58, %v176_v63 }
 0x2b5   :  { %v181_v2 = vmul.f32 %v180_v1, %v146_v46 }
 0x2b7   :  { %v183_v4 = vmul.f32 %v182_v0, %v181_v2 }
 0x2b9   :  { %v185_v5 = vadd.f32 %v184_v3, %v183_v4 }
 0x2bb   :  { %238 = vmatmul.msk.f32.vlgmr.msrb.gmra.mxu1 %vm25_vm0, %v185_v5 }
 0x338   :  { %v215_v7 = vpop.f32.mrf.mxu1 }
 0x339   :  { %v216_v8 = vadd.f32 %v215_v7, %v194_v6 }
 0x33b   :  { %v218_v10 = vmax.f32 %v216_v8, 0.0 }
 0x33d   :  { %v220_v11 = vmul.f32 %v219_v9, %v218_v10 }
 0x33f   :  { %v222_v12 = vsel %vm221_vm4, %v220_v11, 0.0 }
 0x340   :  { %223 = vadd.xlane.f32.xlu0 %v222_v12 }
 0x3b3   :  { %v224_v14 = vpop.xlane.xlu0 %223 }
 0x3b4   :  { %v226_v15 = vadd.f32 %v225_v13, %v224_v14 }
 0x3b6   :  { %228 = vst.msk [vmem:[%s409_s3] sm:$0x3] %vm227_vm5, %v226_v15 }

</bundles_post_ra>
